<compile_context>
chip_gen: v5e
topology: v5e:2x2
jax: 0.10.0
libtpu: 0.0.40
codegen_flags: <defaults>
</compile_context>

<pallas_src>
import numpy as np
import jax
import jax.numpy as jnp
from jax import lax
from jax.experimental import pallas as pl
from jax.experimental.pallas import tpu as pltpu


# ----------------------------------------------------------------------------
# small helpers
# ----------------------------------------------------------------------------

def _round_up(x, m):
    return ((x + m - 1) // m) * m


def _cdiv(a, b):
    return -(-a // b)


def _batch_tile(b):
    # >=2 batch tiles whenever possible (v7x: shard "parallel" axis across both
    # TensorCores); multiple of 16 rows so bf16 blocks are sublane-pack aligned.
    half = _round_up(max((b + 1) // 2, 16), 16)
    return min(256, half)


def _pad2(x, rows, cols):
    r, c = x.shape
    if r == rows and c == cols:
        return x
    return jnp.pad(x, ((0, rows - r), (0, cols - c)))


_VMEM_LIMIT_CACHE = [None]


def _vmem_limit():
    """Generation-aware scoped-VMEM budget (3/4 of capacity, capped at 96 MiB)."""
    if _VMEM_LIMIT_CACHE[0] is None:
        cap = 64 * 1024 * 1024  # conservative fallback (v7x per-TC physical)
        try:
            info = pltpu.get_tpu_info()
            cap = int(getattr(info, "vmem_capacity_bytes", cap) or cap)
        except Exception:
            pass
        _VMEM_LIMIT_CACHE[0] = min((cap * 3) // 4, 96 * 1024 * 1024)
    return _VMEM_LIMIT_CACHE[0]


# ----------------------------------------------------------------------------
# Kernels
# ----------------------------------------------------------------------------

def make_recommendation_kernel(ui_true_ratio, ui_soft_ratio):
    """recomendation_prediction hot path (per batch tile).

    inputs : user_embed(TB,F) bf16, item_embed(TB,F) bf16,
             tags(TB,T) f32, tag_emb(T,F) bf16
    output : (TB,1) f32 user-item interaction (biases added in the wrapper)
    """
    def kernel(user_e_ref, item_e_ref, tags_ref, tag_emb_ref, out_ref):
        item_e = item_e_ref[...]                                   # (TB,F) bf16
        tag_emb = tag_emb_ref[...]                                 # (T,F)  bf16

        # softmax(item_e @ tag_emb.T) without an in-kernel transpose
        logits = lax.dot_general(item_e, tag_emb, (((1,), (1,)), ((), ())),
                                 preferred_element_type=jnp.float32)  # (TB,T)
        m = jnp.max(logits, axis=1, keepdims=True)
        e = jnp.exp(logits - m)
        soft_w = e * pl.reciprocal(jnp.sum(e, axis=1, keepdims=True), approx=True)

        # single combined (TB,T)@(T,F) matmul instead of two
        w = (ui_true_ratio * tags_ref[...] + ui_soft_ratio * soft_w)
        agg = jnp.dot(w.astype(jnp.bfloat16), tag_emb,
                      preferred_element_type=jnp.float32)            # (TB,F)

        enhanced_item = item_e.astype(jnp.float32) + agg
        out_ref[...] = jnp.sum(user_e_ref[...].astype(jnp.float32) * enhanced_item,
                               axis=1, keepdims=True)
    return kernel


def make_content_proj_kernel(w_total, tw, nw):
    """(B,W) @ (W,F) with the W (num_word) axis tiled as a reduction.

    contents are raw f32 (no wrapper pad); the partial last W tile is zero-masked
    in-kernel so garbage edge-block bits never hit the zero-padded weight rows.
    """
    w_rem = w_total % tw

    def kernel(contents_ref, w_ref, out_ref):
        k = pl.program_id(1)

        @pl.when(k == 0)
        def _():
            out_ref[...] = jnp.zeros_like(out_ref)

        c = contents_ref[...]                                        # (TB,TW) f32
        if w_rem != 0:
            col = lax.broadcasted_iota(jnp.int32, c.shape, 1)
            c = jnp.where(jnp.logical_or(k < nw - 1, col < w_rem), c, 0.0)
        out_ref[...] += jnp.dot(c.astype(jnp.bfloat16), w_ref[...],
                                preferred_element_type=jnp.float32)
    return kernel


def make_user_stream_kernel(it_true_ratio, it_soft_ratio, u_total, tu, nu):
    """tag_prediction user aggregation: online softmax over user_embeddings tiles.

    grid = (batch tiles "parallel", U tiles "arbitrary").
    inputs : content_proj(TB,F) f32, item_embed(TB,F) bf16,
             item_users(TB,TU) f32 (raw), user_emb(TU,F) bf16 (zero-padded rows)
    output : hidden(TB,F) bf16 = sigmoid(input_layer)   (output layer is stage 3)
    """
    u_rem = u_total % tu  # static: 0 means no partial U tile -> no masking at all

    def kernel(content_ref, item_e_ref, item_users_ref, user_emb_ref,
               hidden_ref, m_sc, l_sc, acc_true, acc_soft):
        u = pl.program_id(1)

        @pl.when(u == 0)
        def _():
            m_sc[...] = jnp.full_like(m_sc, -jnp.inf)
            l_sc[...] = jnp.zeros_like(l_sc)
            acc_true[...] = jnp.zeros_like(acc_true)
            acc_soft[...] = jnp.zeros_like(acc_soft)

        def step(mask_tail):
            iu = item_users_ref[...]                                 # (TB,TU) f32
            user_emb = user_emb_ref[...]                             # (TU,F)  bf16
            item_e = item_e_ref[...]                                 # (TB,F)  bf16
            if mask_tail:
                col = lax.broadcasted_iota(jnp.int32, iu.shape, 1)
                valid = col < u_rem
                iu = jnp.where(valid, iu, 0.0)                       # kill edge garbage

            # users_aggregate_from_true_labels (plain tiled reduction)
            acc_true[...] += jnp.dot(iu.astype(jnp.bfloat16), user_emb,
                                     preferred_element_type=jnp.float32)

            # item_e @ user_emb.T for this U tile (no in-kernel transpose)
            s = lax.dot_general(item_e, user_emb, (((1,), (1,)), ((), ())),
                                preferred_element_type=jnp.float32)  # (TB,TU)
            if mask_tail:
                s = jnp.where(valid, s, -jnp.inf)

            # online-softmax accumulation (flash style)
            m_prev = m_sc[...]
            m_new = jnp.maximum(m_prev, jnp.max(s, axis=1, keepdims=True))
            alpha = jnp.exp(m_prev - m_new)
            p = jnp.exp(s - m_new)
            l_sc[...] = alpha * l_sc[...] + jnp.sum(p, axis=1, keepdims=True)
            acc_soft[...] = alpha * acc_soft[...] + jnp.dot(
                p.astype(jnp.bfloat16), user_emb, preferred_element_type=jnp.float32)
            m_sc[...] = m_new

        if u_rem == 0:
            # U divides TU exactly: no mask code anywhere in the loop.
            step(False)
        else:
            # Mask hoisted out of the steady state: only the last tile pays for it.
            @pl.when(u < nu - 1)
            def _():
                step(False)

            @pl.when(u == nu - 1)
            def _():
                step(True)

        @pl.when(u == nu - 1)
        def _():
            users_agg_soft = acc_soft[...] * pl.reciprocal(l_sc[...], approx=True)
            input_layer = (content_ref[...]
                           + it_true_ratio * acc_true[...]
                           + it_soft_ratio * users_agg_soft)
            hidden_ref[...] = jax.nn.sigmoid(input_layer).astype(jnp.bfloat16)
    return kernel


def output_layer_kernel(hidden_ref, out_w_ref, pred_ref, logp_ref):
    """tag_prediction output layer: logits = hidden @ out_w, softmax + log-softmax."""
    logits = jnp.dot(hidden_ref[...], out_w_ref[...],
                     preferred_element_type=jnp.float32)             # (TB,T)
    m = jnp.max(logits, axis=1, keepdims=True)
    e = jnp.exp(logits - m)
    denom = jnp.sum(e, axis=1, keepdims=True)
    pred_ref[...] = (e * pl.reciprocal(denom, approx=True)).astype(pred_ref.dtype)
    logp_ref[...] = logits - (m + jnp.log(denom))


# ----------------------------------------------------------------------------
# Wrappers (pallas_call + glue)
# ----------------------------------------------------------------------------

def recommendation_prediction(params, args, users, items, tags):
    user_e = params["user_emb"][users].astype(jnp.bfloat16)         # (B,F)
    item_e = params["item_emb"][items].astype(jnp.bfloat16)
    tags = jnp.asarray(tags, jnp.float32)                           # (B,T) raw
    B, F = user_e.shape
    T = int(params["tag_emb"].shape[0])

    TB = _batch_tile(B)
    nb = _cdiv(B, TB)
    tag_emb_b = params["tag_emb"].astype(jnp.bfloat16)

    kernel = make_recommendation_kernel(float(args.ui_true_label_ratio),
                                        float(args.ui_soft_label_ratio))
    ui = pl.pallas_call(
        kernel,
        out_shape=jax.ShapeDtypeStruct((B, 1), jnp.float32),
        grid=(nb,),
        in_specs=[pl.BlockSpec((TB, F), lambda i: (i, 0)),
                  pl.BlockSpec((TB, F), lambda i: (i, 0)),
                  pl.BlockSpec((TB, T), lambda i: (i, 0)),
                  pl.BlockSpec((T, F), lambda i: (0, 0))],
        out_specs=pl.BlockSpec((TB, 1), lambda i: (i, 0)),
        compiler_params=pltpu.CompilerParams(
            dimension_semantics=("parallel",),
            vmem_limit_bytes=_vmem_limit()),
    )(user_e, item_e, tags, tag_emb_b)

    gb = params["global_bias"][0, 0]
    ub = params["user_bias"][users][:, 0]
    ib = params["item_bias"][items][:, 0]
    return gb + ub + ib + ui[:, 0]                                   # (B,) logits


def tag_prediction(params, args, item_contents, items, item_users):
    item_e = params["item_emb"][items].astype(jnp.bfloat16)         # (B,F)
    item_contents = jnp.asarray(item_contents, jnp.float32)         # (B,W) raw
    item_users = jnp.asarray(item_users, jnp.float32)               # (B,U) raw
    B, F = item_e.shape
    U = int(params["user_emb"].shape[0])
    W = int(params["tag_pred_w"].shape[0])
    T = int(params["tag_pred_out_w"].shape[1])

    TB = _batch_tile(B)
    nb = _cdiv(B, TB)
    TU = min(512, _round_up(U, 128))
    nu = _cdiv(U, TU)
    TW = min(512, _round_up(W, 128))
    nw = _cdiv(W, TW)

    # Only the small weight tables get padded/cast; the big (B,U)/(B,W) streams
    # go to the kernels untouched.
    user_emb_p = _pad2(params["user_emb"].astype(jnp.bfloat16), nu * TU, F)
    tp_w_p = _pad2(params["tag_pred_w"].astype(jnp.bfloat16), nw * TW, F)
    out_w_b = params["tag_pred_out_w"].astype(jnp.bfloat16)
    vmem = _vmem_limit()

    # Stage 1: item_contents @ tag_predictor_weight, W-tiled reduction.
    content_proj = pl.pallas_call(
        make_content_proj_kernel(W, TW, nw),
        out_shape=jax.ShapeDtypeStruct((B, F), jnp.float32),
        grid=(nb, nw),
        in_specs=[pl.BlockSpec((TB, TW), lambda i, k: (i, k)),
                  pl.BlockSpec((TW, F), lambda i, k: (k, 0))],
        out_specs=pl.BlockSpec((TB, F), lambda i, k: (i, 0)),
        compiler_params=pltpu.CompilerParams(
            dimension_semantics=("parallel", "arbitrary"),
            vmem_limit_bytes=vmem),
    )(item_contents, tp_w_p)

    # Stage 2: user aggregation (online softmax over U tiles) -> hidden (B,F) bf16.
    hidden = pl.pallas_call(
        make_user_stream_kernel(float(args.it_true_label_ratio),
                                float(args.it_soft_label_ratio), U, TU, nu),
        out_shape=jax.ShapeDtypeStruct((B, F), jnp.bfloat16),
        grid=(nb, nu),
        in_specs=[pl.BlockSpec((TB, F), lambda i, u: (i, 0)),
                  pl.BlockSpec((TB, F), lambda i, u: (i, 0)),
                  pl.BlockSpec((TB, TU), lambda i, u: (i, u)),
                  pl.BlockSpec((TU, F), lambda i, u: (u, 0))],
        out_specs=pl.BlockSpec((TB, F), lambda i, u: (i, 0)),
        scratch_shapes=[pltpu.VMEM((TB, 1), jnp.float32),   # m
                        pltpu.VMEM((TB, 1), jnp.float32),   # l
                        pltpu.VMEM((TB, F), jnp.float32),   # acc_true
                        pltpu.VMEM((TB, F), jnp.float32)],  # acc_soft
        compiler_params=pltpu.CompilerParams(
            dimension_semantics=("parallel", "arbitrary"),
            vmem_limit_bytes=vmem),
    )(content_proj, item_e, item_users, user_emb_p)

    # Stage 3: output layer + softmax / log-softmax, batch-parallel, pipelined.
    pred, logp = pl.pallas_call(
        output_layer_kernel,
        out_shape=(jax.ShapeDtypeStruct((B, T), jnp.bfloat16),
                   jax.ShapeDtypeStruct((B, T), jnp.float32)),
        grid=(nb,),
        in_specs=[pl.BlockSpec((TB, F), lambda i: (i, 0)),
                  pl.BlockSpec((F, T), lambda i: (0, 0))],
        out_specs=(pl.BlockSpec((TB, T), lambda i: (i, 0)),
                   pl.BlockSpec((TB, T), lambda i: (i, 0))),
        compiler_params=pltpu.CompilerParams(
            dimension_semantics=("parallel",),
            vmem_limit_bytes=vmem),
    )(hidden, out_w_b)

    return pred, logp


# ----------------------------------------------------------------------------
# Losses (logit-space formulations for f32 robustness)
# ----------------------------------------------------------------------------

def bce_with_logits(logits, g):
    # == torch.nn.BCELoss()(sigmoid(logits), g), stable for large |logits|
    return jnp.mean(jax.nn.softplus(logits) - g * logits)


# ----------------------------------------------------------------------------
# forward (host-side partitioning by tag_tranable, as in the reference)
# ----------------------------------------------------------------------------

def forward(params, args, user_batch, item_batch, tag_batch, item_content_batch,
            item_users_batch, tag_tranable, ground_truth):
    users = jnp.asarray(user_batch, jnp.int32)
    items = jnp.asarray(item_batch, jnp.int32)
    tags = jnp.asarray(tag_batch, jnp.float32)
    item_contents = jnp.asarray(item_content_batch, jnp.float32)
    item_users = jnp.asarray(item_users_batch, jnp.float32)
    ground = jnp.asarray(ground_truth, jnp.float32)
    tt = np.asarray(tag_tranable)

    user_item_loss = jnp.float32(0.0)
    item_tag_loss = jnp.float32(0.0)

    idx_A = np.concatenate([np.where(tt == 1)[0], np.where(tt == 2)[0]]).astype(np.int64)
    idx_B = np.where(tt == 0)[0].astype(np.int64)
    idx_C = np.concatenate([np.where(tt == 0)[0], np.where(tt == 2)[0]]).astype(np.int64)

    # ---- single tag_prediction launch over the union of rows that need it
    rows_need = []
    if len(idx_A) > 0 and not args.input_part_tags:
        rows_need.append(idx_A)
    if len(idx_C) > 0:
        rows_need.append(idx_C)
    tag_pred_u = logp_u = None
    pos = None
    if rows_need:
        union = np.unique(np.concatenate(rows_need))
        pos = np.full(tt.shape[0], -1, dtype=np.int64)
        pos[union] = np.arange(len(union))
        tag_pred_u, logp_u = tag_prediction(
            params, args, item_contents[union], items[union], item_users[union])

    # ---- both recommendation branches fused into one launch
    rec_chunks = []
    if len(idx_A) > 0:
        tags_A = tags[idx_A] if args.input_part_tags else tag_pred_u[pos[idx_A]]
        rec_chunks.append((idx_A, tags_A))
    if len(idx_B) > 0:
        rec_chunks.append((idx_B, tags[idx_B]))
    if rec_chunks:
        rows = np.concatenate([c[0] for c in rec_chunks])
        tags_cat = jnp.concatenate(
            [jnp.asarray(c[1], jnp.float32) for c in rec_chunks], axis=0)
        rec_logits = recommendation_prediction(params, args, users[rows],
                                               items[rows], tags_cat)
        off = 0
        for idx_r, _ in rec_chunks:
            n = len(idx_r)
            user_item_loss = user_item_loss + bce_with_logits(
                rec_logits[off:off + n], ground[idx_r])
            off += n

    # ---- multi-label tag loss on (0)+(2), using in-kernel log-softmax
    if len(idx_C) > 0:
        logp_C = logp_u[pos[idx_C]]
        item_tag_loss = item_tag_loss + jnp.mean(-jnp.sum(tags[idx_C] * logp_C, axis=1))

    loss = args.alpha * user_item_loss + args.beta * item_tag_loss
    return loss, user_item_loss, item_tag_loss


# ----------------------------------------------------------------------------
# Pure-JAX reference (mirrors the PyTorch module, f32) for validation
# ----------------------------------------------------------------------------

def _ref_recommendation(params, args, users, items, tags):
    user_e = params["user_emb"][users]
    item_e = params["item_emb"][items]
    gb = params["global_bias"][0, 0]
    ub = params["user_bias"][users][:, 0]
    ib = params["item_bias"][items][:, 0]
    tag_emb = params["tag_emb"]
    agg_true = tags @ tag_emb
    soft_w = jax.nn.softmax(item_e @ tag_emb.T, axis=1)
    agg_soft = soft_w @ tag_emb
    enhanced = (item_e + args.ui_true_label_ratio * agg_true
                + args.ui_soft_label_ratio * agg_soft)
    return gb + ub + ib + jnp.sum(user_e * enhanced, axis=1)


def _ref_tag_prediction(params, args, contents, items, iusers):
    item_e = params["item_emb"][items]
    user_emb = params["user_emb"]
    agg_true = iusers @ user_emb
    soft_w = jax.nn.softmax(item_e @ user_emb.T, axis=1)
    agg_soft = soft_w @ user_emb
    input_layer = (contents @ params["tag_pred_w"]
                   + args.it_true_label_ratio * agg_true
                   + args.it_soft_label_ratio * agg_soft)
    hidden = jax.nn.sigmoid(input_layer)
    logits = hidden @ params["tag_pred_out_w"]
    return jax.nn.softmax(logits, axis=1), logits


def _ref_forward(params, args, user_batch, item_batch, tag_batch, item_content_batch,
                 item_users_batch, tag_tranable, ground_truth):
    users = jnp.asarray(user_batch, jnp.int32)
    items = jnp.asarray(item_batch, jnp.int32)
    tags = jnp.asarray(tag_batch, jnp.float32)
    item_contents = jnp.asarray(item_content_batch, jnp.float32)
    item_users = jnp.asarray(item_users_batch, jnp.float32)
    ground = jnp.asarray(ground_truth, jnp.float32)
    tt = np.asarray(tag_tranable)

    def bce(p, g):
        return -jnp.mean(g * jnp.log(p) + (1.0 - g) * jnp.log(1.0 - p))

    ui_loss = jnp.float32(0.0)
    it_loss = jnp.float32(0.0)
    idx = np.concatenate([np.where(tt == 1)[0], np.where(tt == 2)[0]])
    if len(idx) > 0:
        tp, _ = _ref_tag_prediction(params, args, item_contents[idx], items[idx],
                                    item_users[idx])
        t_in = tags[idx] if args.input_part_tags else tp
        r = _ref_recommendation(params, args, users[idx], items[idx], t_in)
        ui_loss = ui_loss + bce(jax.nn.sigmoid(r), ground[idx])
    idx = np.where(tt == 0)[0]
    if len(idx) > 0:
        r = _ref_recommendation(params, args, users[idx], items[idx], tags[idx])
        ui_loss = ui_loss + bce(jax.nn.sigmoid(r), ground[idx])
    idx = np.concatenate([np.where(tt == 0)[0], np.where(tt == 2)[0]])
    if len(idx) > 0:
        tp, _ = _ref_tag_prediction(params, args, item_contents[idx], items[idx],
                                    item_users[idx])
        it_loss = it_loss + jnp.mean(-jnp.sum(tags[idx] * jnp.log(tp), axis=1))
    loss = args.alpha * ui_loss + args.beta * it_loss
    return loss, ui_loss, it_loss


# ----------------------------------------------------------------------------
# Deterministic parameter init (mirrors __init__: uniform(-0.1, 0.1))
# ----------------------------------------------------------------------------

def init_params(key, num_users, num_items, num_tags, num_word, num_factors):
    ks = jax.random.split(key, 10)
    u = lambda k, shp: jax.random.uniform(k, shp, jnp.float32, -0.1, 0.1)
    return dict(
        user_emb=u(ks[0], (num_users, num_factors)),
        item_emb=u(ks[1], (num_items, num_factors)),
        tag_emb=u(ks[2], (num_tags, num_factors)),
        user_bias=u(ks[3], (num_users, 1)),
        item_bias=u(ks[4], (num_items, 1)),
        global_bias=u(ks[5], (1, 1)),
        tag_pred_w=u(ks[6], (num_word, num_factors)),
        tag_pred_out_w=u(ks[7], (num_factors, num_tags)),
        # user_tag_predictor_* exist in __init__ but are unused by forward():
        user_tag_pred_w=u(ks[8], (num_users, num_factors)),
        user_tag_pred_out_w=u(ks[9], (num_factors, num_tags)),
    )


class Args:
    reg = 0.01
    alpha = 1.0
    beta = 0.5
    ui_true_label_ratio = 0.3
    ui_soft_label_ratio = 0.2
    it_true_label_ratio = 0.4
    it_soft_label_ratio = 0.1
    input_part_tags = False
    tag_pre_train = False
    tag_ratio = 0.2


if __name__ == "__main__":
    # Shapes chosen to exercise: 2 batch tiles with a partial edge tile (B=24,
    # TB=16), 2 U tiles with a masked tail (U=900, TU=512), 2 W tiles with a
    # masked tail (W=700, TW=512), and an un-padded tag axis (T=50).
    num_users, num_items, num_tags, num_word, num_factors = 900, 64, 50, 700, 16
    batch = 24
    args = Args()

    key = jax.random.PRNGKey(0)
    kp, k1, k2, k3, k4, k5 = jax.random.split(key, 6)
    params = init_params(kp, num_users, num_items, num_tags, num_word, num_factors)

    user_batch = np.asarray(jax.random.randint(k1, (batch,), 0, num_users))
    item_batch = np.asarray(jax.random.randint(k2, (batch,), 0, num_items))
    tag_batch = np.asarray(
        (jax.random.uniform(k3, (batch, num_tags)) > 0.7)).astype(np.float32)
    item_content_batch = np.asarray(jax.random.uniform(k4, (batch, num_word)),
                                    dtype=np.float32)
    item_users_batch = np.asarray(
        (jax.random.uniform(k5, (batch, num_users)) > 0.95)).astype(np.float32)
    tag_tranable = np.array([1, 0, 2] * (batch // 3))
    ground_truth = (np.arange(batch) % 2).astype(np.float32)

    out = forward(params, args, user_batch, item_batch, tag_batch,
                  item_content_batch, item_users_batch, tag_tranable, ground_truth)
    jax.block_until_ready(out)

    ref = _ref_forward(params, args, user_batch, item_batch, tag_batch,
                       item_content_batch, item_users_batch, tag_tranable,
                       ground_truth)
    for got, want in zip(out, ref):
        np.testing.assert_allclose(np.asarray(got), np.asarray(want),
                                   rtol=5e-2, atol=1e-3)
    print("KERNEL_OK")
</pallas_src>

<mosaic_0001>
module attributes {stable_mosaic.version = 11 : i64} {
  func.func @kernel(%arg0: i32, %arg1: i32, %arg2: memref<16x512xf32, #tpu.memory_space<vmem>>, %arg3: memref<512x16xbf16, #tpu.memory_space<vmem>>, %arg4: memref<16x16xf32, #tpu.memory_space<vmem>>) attributes {dimension_semantics = [#tpu.dimension_semantics<parallel>, #tpu.dimension_semantics<arbitrary>], iteration_bounds = array<i64: 2, 2>, scalar_prefetch = 0 : i64, scratch_operands = 0 : i64, tpu.core_type = #tpu.core_type<tc>, window_params = [{transform_indices = @transform_0, window_bounds = array<i64: 16, 512>}, {transform_indices = @transform_1, window_bounds = array<i64: 512, 16>}, {transform_indices = @transform_2, window_bounds = array<i64: 16, 16>}]} {
    %c0_i32 = arith.constant 0 : i32
    %0 = arith.cmpi eq, %arg1, %c0_i32 : i32
    %1 = arith.extui %0 : i1 to i32
    %c0_i32_0 = arith.constant 0 : i32
    %2 = arith.cmpi ne, %1, %c0_i32_0 : i32
    scf.if %2 {
      %cst_9 = arith.constant 0.000000e+00 : f32
      %18 = vector.broadcast %cst_9 : f32 to vector<16x16xf32>
      %c0_10 = arith.constant 0 : index
      %c0_11 = arith.constant 0 : index
      %19 = vector.load %arg4[%c0_10, %c0_11] : memref<16x16xf32, #tpu.memory_space<vmem>>, vector<16x16xf32>
      tpu.vector_store %arg4[%c0_10, %c0_11], %18 {strides = array<i32>} : memref<16x16xf32, #tpu.memory_space<vmem>>, vector<16x16xf32>,
    } else {
    }
    %c0 = arith.constant 0 : index
    %c0_1 = arith.constant 0 : index
    %3 = vector.load %arg2[%c0, %c0_1] : memref<16x512xf32, #tpu.memory_space<vmem>>, vector<16x512xf32>
    %4 = tpu.iota {dimensions = array<i32: 1>} : vector<16x512xi32>
    %c1_i32 = arith.constant 1 : i32
    %5 = arith.cmpi slt, %arg1, %c1_i32 : i32
    %c188_i32 = arith.constant 188 : i32
    %6 = vector.broadcast %c188_i32 : i32 to vector<16x512xi32>
    %7 = arith.cmpi slt, %4, %6 : vector<16x512xi32>
    %8 = vector.broadcast %5 : i1 to vector<16x512xi1>
    %9 = arith.ori %8, %7 : vector<16x512xi1>
    %cst = arith.constant 0.000000e+00 : f32
    %10 = vector.broadcast %cst : f32 to vector<16x512xf32>
    %11 = arith.select %9, %3, %10 : vector<16x512xi1>, vector<16x512xf32>
    %c0_2 = arith.constant 0 : index
    %c0_3 = arith.constant 0 : index
    %12 = vector.load %arg4[%c0_2, %c0_3] : memref<16x16xf32, #tpu.memory_space<vmem>>, vector<16x16xf32>
    %13 = arith.truncf %11 : vector<16x512xf32> to vector<16x512xbf16>
    %c0_4 = arith.constant 0 : index
    %c0_5 = arith.constant 0 : index
    %14 = vector.load %arg3[%c0_4, %c0_5] : memref<512x16xbf16, #tpu.memory_space<vmem>>, vector<512x16xbf16>
    %cst_6 = arith.constant dense<0.000000e+00> : vector<16x16xf32>
    %15 = tpu.matmul %13, %14, %cst_6 {dimension_numbers = #tpu.dot_dimension_numbers<[1], [0], [0], [1], [0, 0, 1, 1], [], []>} : vector<16x512xbf16>, vector<512x16xbf16>, vector<16x16xf32> -> vector<16x16xf32>
    %16 = arith.addf %12, %15 : vector<16x16xf32>
    %c0_7 = arith.constant 0 : index
    %c0_8 = arith.constant 0 : index
    %17 = vector.load %arg4[%c0_7, %c0_8] : memref<16x16xf32, #tpu.memory_space<vmem>>, vector<16x16xf32>
    tpu.vector_store %arg4[%c0_7, %c0_8], %16 {strides = array<i32>} : memref<16x16xf32, #tpu.memory_space<vmem>>, vector<16x16xf32>,
    return
  }
  func.func @transform_0(%arg0: i32, %arg1: i32) -> (i32, i32) {
    %c0_i32 = arith.constant 0 : i32
    return %arg0, %arg1 : i32, i32
  }
  func.func @transform_1(%arg0: i32, %arg1: i32) -> (i32, i32) {
    %c0_i32 = arith.constant 0 : i32
    %c0_i32_0 = arith.constant 0 : i32
    return %arg1, %c0_i32 : i32, i32
  }
  func.func @transform_2(%arg0: i32, %arg1: i32) -> (i32, i32) {
    %c0_i32 = arith.constant 0 : i32
    %c0_i32_0 = arith.constant 0 : i32
    return %arg0, %c0_i32 : i32, i32
  }
}

</mosaic_0001>

<bundles_post_ra>
// kernel: tpu_custom_call.1
= control target key start
LH: loop header
LB: loop body
LE: loop exit
PB: predicated region body
PF: predicated region fallthrough
CT: control target
= control target key end

     0   :  { %s3196_s0 = inlined_call_operand.vmem [shape: f32[24,700], index: 0, kind: input, shape index: {}]   ;;  %s3197_s1 = inlined_call_operand.vmem [shape: bf16[1024,16], index: 1, kind: input, shape index: {}]   ;;  %s3198_s2 = inlined_call_operand.vmem [shape: f32[24,16], index: 2, kind: output, shape index: {}]  }
   0x1   :  { %3207 = sst [smem:[#allocation14_spill]] %s3196_s0 }
   0x2   :  { %3208 = sst [smem:[#allocation15_spill]] %s3198_s2 }
   0x3   :  { %s2792_s9 = smov 0   ;;  %s2794_s10 = smov 0  }
   0x4   :  { %s2796_s11 = smov 0   ;;  %s2798_s12 = smov 0  }
   0x5   :  { %s2800_s13 = smov 0   ;;  %s2802_s14 = smov 0  }
   0x6   :  { %s2804_s15 = smov 0   ;;  %s2806_s16 = smov 0  }
   0x7   :  { %s2808_s17 = smov 0  }
   0x8 LB: > { %3209 = sst [smem:[#allocation4_spill]] %s2608_s10  ;;  %s21_s18 = sadd.s32 1, %s2628_s15  ;;  %s2636_s17 = sphi %s2808_s17, %s12_s17   ;;  %s2632_s16 = sphi %s2806_s16, %s3246_s16   ;;  %s2628_s15 = sphi %s2804_s15, %s3245_s15   ;;  %s2624_s14 = sphi %s2802_s14, %s3244_s14   ;;  %s2620_s13 = sphi %s2800_s13, %s3243_s13   ;;  %s2616_s12 = sphi %s2798_s12, %s3242_s12   ;;  %s2612_s11 = sphi %s2796_s11, %s3241_s11   ;;  %s2608_s10 = sphi %s2794_s10, %s3240_s10   ;;  %s2604_s9 = sphi %s2792_s9, %s3239_s9  }
   0x9   : > { %3210 = sst [smem:[#allocation5_spill]] %s2616_s12  ;;  %p22_p0 = scmp.ge.s32.totalorder %s21_s18, 2 }
   0xa   : > { %3211 = sst [smem:[#allocation6_spill]] %s2624_s14  ;;  %s24_s19 = sadd.s32 1, %s2632_s16 }
   0xb   : > { %3212 = sst [smem:[#allocation7_spill]] %s2628_s15  ;;  %p40_p1 = scmp.ne.s32.totalorder %s2616_s12, %s2612_s11 }
   0xc   : > { %3213 = sst [smem:[#allocation8_spill]] %s2632_s16  ;;  %s3248_s18 = smov (%p22_p0, %s21_s18), 0 }
   0xd   : > { %3214 = sst [smem:[#allocation9_spill]] %s3248_s18  ;;  %s3250_s19 = smov (!%p22_p0, %s24_s19), %s2632_s16 }
   0xe   : > { %s1572_s20 = sadd.s32 4294967295, %s2636_s17   ;;  %p41_p2 = scmp.eq.s32.totalorder %s2636_s17, 0 }
   0xf   : > { %p26_p3 = scmp.ge.s32.totalorder %s3250_s19, 2  ;;  %s29_s21 = ssub.s32 %s2628_s15, %s3248_s18 }
  0x10   : > { %p2848_p4 = por %p41_p2, %p40_p1  ;;  %p95_p5 = scmp.ne.s32.totalorder %s2608_s10, %s2604_s9 }
  0x11   : > { %s3252_s19 = smov (%p26_p3, %s3250_s19), 0  ;;  %s33_s23 = sadd.s32 1, %s2616_s12 }
  0x12   : > { %3216 = sst [smem:[#allocation10_spill]] %s3252_s19  ;;  %p96_p6 = scmp.eq.s32.totalorder %s1572_s20, 3 }
  0x13   : > { %s28_s24 = ssub.s32 %s2632_s16, %s3252_s19  ;;  %s85_s25 = sadd.s32 1, %s2608_s10 }
  0x14   : > { %s30_s26 = sor.u32 %s29_s21, %s28_s24  ;;  %p83_p7 = scmp.eq.s32.totalorder %s28_s24, 0 }
  0x15   : > { %p31_p8 = scmp.eq.s32.totalorder %s30_s26, 0  ;;  %p2860_p9 = por %p96_p6, %p95_p5 }
  0x16   : > { %s2865_s28 = scalar_select %p83_p7, %s2608_s10, %s85_s25  }
  0x17   : > { %s3217_s27 = scalar_select %p2860_p9, 1, 0 }
  0x18   : > { %3219 = sst [smem:[#allocation12_spill]] %s2865_s28  ;;  %p1575_p10 = scmp.ge.s32.totalorder %s2636_s17, 4 }
  0x19   : > { %3218 = sst [smem:[#allocation11_spill]] %s3217_s27 }
  0x1a   : > { %s2868_s29 = scalar_select %p31_p8, %s2616_s12, %s33_s23  }
  0x1b   : > { %118 = sbr.rel (%p1575_p10) target bundleno = 168 (0xa8), region = 16 }
  0x1c   : > { %3220 = sst [smem:[#allocation13_spill]] %s2868_s29 }
  0x20   : > { %121 = sbr.rel (!%p2848_p4) target bundleno = 168 (0xa8), region = 20  ;;  %s123_s30 = sand.u32 (%p2848_p4), 1, %s2616_s12  }
  0x21   : > { %s1577_s3 = sshll.u32 (%p2848_p4), %s2632_s16, 1  ;;  %s1576_s4 = sshll.u32 (%p2848_p4), %s123_s30, 6 }
  0x22   : > { %s1578_s5 = sshll.u32 (%p2848_p4), %s2628_s15, 2  ;;  %s128_s6 = ssub.s32 (%p2848_p4), 3, %s1577_s3 }
  0x23   : > { %p129_p11 = scmp.lt.s32.totalorder (%p2848_p4), %s128_s6, 2  ;;  %s132_s7 = ssub.s32 (%p2848_p4), 6, %s1578_s5 }
  0x24   : > { %p133_p12 = scmp.lt.s32.totalorder (%p2848_p4), %s132_s7, 4  ;;  %s1842_s8 = smul.u32 (%p2848_p4), 12, %s2632_s16 }
  0x25   : > { %s3254_s6 = smov (!%p129_p11, %s128_s6), 2  ;;  %s3221_s0 = sld [smem:[#allocation14_spill]] }
  0x26   : > { %s3256_s7 = smov (!%p133_p12, %s132_s7), 4  ;;  %s1579_s20 = sshll.u32 %s3254_s6, 3 }
  0x27   : > { %s138_s21 = sadd.s32 %s1842_s8, %s1578_s5  ;;  %s135_s22 = smul.u32 %s1579_s20, %s3256_s7 }
  0x28   : > { %s1582_s23 = sshll.u32 %s138_s21, 3  ;;  %s2885_s30 = sshll.u32 %s3256_s7, 3 }
  0x29   : > { %s2887_s3 = scalar_lea.vmem [#allocation2], %s1576_s4   ;;  %p1584_p13 = scmp.eq.s32.totalorder %s135_s22, 0 }
  0x2a   : > { %p145_p0 = scmp.lt.u32.totalorder (!%p1584_p13), %s2885_s30, 8 }
  0x2b   : > { %s2883_s26 = scalar_lea.vmem %s3221_s0, %s1582_s23   ;;  %144 = sbr.rel (%p1584_p13) target bundleno = 168 (0xa8), region = 24 }
  0x30   : > { %148 = sbr.rel (%p145_p0) target bundleno = 132 (0x84), region = 28  ;;  %s2891_s19 = sand.u32 (!%p145_p0), 7, %s2885_s30  }
  0x31   : > { %p201_p1 = scmp.eq.s32.totalorder (!%p145_p0), %s2891_s19, 0  ;;  %p1585_p2 = scmp.ne.s32.totalorder (!%p145_p0), %s2891_s19, 0 }
  0x35   : > { %204 = sbr.rel (%p1585_p2) target bundleno = 75 (0x4b), region = 50  ;;  %s205_s5 = sshrl.u32 (!%p1585_p2), %s2885_s30, 3 }
  0x36   : > { %s207_s4 = sshrl.u32 (!%p1585_p2), %s205_s5, 4  ;;  %s2896_s7 = sand.u32 (!%p1585_p2), 15, %s205_s5  }
  0x37   : > { %s1800_s8 = sshll.u32 (!%p1585_p2), %s207_s4, 7  ;;  %s2906_s22 = smul.u32 (!%p1585_p2), %s2896_s7, %s3254_s6 }
  0x38   : > { %s2899_s20 = scalar_lea.vmem (!%p1585_p2), %s2883_s26, %s1800_s8   ;;  %s2902_s21 = scalar_lea.vmem (!%p1585_p2), %s2887_s3, %s1800_s8 [#allocation2]  }
  0x39   : > { %p1600_p3 = scmp.le.s32.totalorder (!%p1585_p2), %s2906_s22, 0 }
  0x3a   : > { %s3222_s23 = smov (!%p1600_p3), %s2902_s21  ;;  %s3223_s24 = smov (!%p1600_p3), %s2899_s20 }
  0x3b   : > { %1388 = sbr.rel (%p1600_p3) target bundleno = 75 (0x4b), region = 270  ;;  %s2915_s25 = smov (!%p1600_p3), 0  }
  0x3c   : > { %s2917_s5 = smov (!%p1600_p3), 0   ;;  %s2919_s4 = smov (!%p1600_p3), 0  }
  0x40 LB: >> { %v382_v0 = vld [vmem:[%s2644_s24] sm:$0xff]  ;;  %s384_s8 = sadd.s32 1, %s2648_s25  ;;  %s387_s0 = sadd.s32 1, %s2652_s5  ;;  %s2656_s4 = sphi %s2919_s4, %s375_s4   ;;  %s2652_s5 = sphi %s2917_s5, %s3225_s5   ;;  %s2648_s25 = sphi %s2915_s25, %s3224_s25   ;;  %s2644_s24 = sphi %s3223_s24, %s397_s24   ;;  %s2640_s23 = sphi %s3222_s23, %s398_s23  }
  0x41   : >> { %383 = vst [vmem:[%s2640_s23] sm:$0xff] %v382_v0  ;;  %p385_p4 = scmp.ge.s32.totalorder %s384_s8, %s2896_s7  ;;  %s375_s4 = sadd.s32 1, %s2656_s4  }
  0x42   : >> { %p374_p6 = scmp.ge.s32.totalorder %s375_s4, %s2906_s22 }
  0x43   : >> { %s3258_s8 = smov (%p385_p4, %s384_s8), 0  ;;  %s3260_s0 = smov (!%p385_p4, %s387_s0), %s2652_s5 }
  0x44   : >> { %p389_p5 = scmp.ge.s32.totalorder %s3260_s0, %s3254_s6  ;;  %s1601_s18 = sshll.u32 %s3258_s8, 3 }
  0x45   : >> { %s3224_s25 = smov %s3258_s8 }
  0x46   : >> { %s3262_s0 = smov (%p389_p5, %s3260_s0), 0  ;;  %377 = sbr.rel (!%p374_p6) target bundleno = 64 (0x40), region = 276 }
  0x47   : >> { %s391_s16 = smul.u32 48, %s3262_s0  ;;  %s1602_s15 = sshll.u32 %s3262_s0, 5 }
  0x48   : >> { %s396_s29 = sadd.s32 %s1602_s15, %s1601_s18  ;;  %s3225_s5 = smov %s3262_s0 }
  0x49   : >> { %s393_s12 = sadd.s32 %s1601_s18, %s391_s16  ;;  %s398_s23 = scalar_lea.vmem %s2902_s21, %s396_s29 [#allocation2]  }
  0x4a   : >> { %s397_s24 = scalar_lea.vmem %s2899_s20, %s393_s12  }
  0x4b PF: > { %401 = sbr.rel (%p201_p1) target bundleno = 132 (0x84), region = 75  ;;  %s403_s12 = ssub.s32 (!%p201_p1), %s2885_s30, %s2891_s19 }
  0x4c   : > { %s407_s0 = sshrl.u32 (!%p201_p1), %s2885_s30, 3  ;;  %s2947_s15 = scalar_lea.vmem (!%p201_p1), %s2883_s26, %s403_s12  }
  0x4d   : > { %s2950_s16 = scalar_lea.vmem (!%p201_p1), %s2887_s3, %s403_s12 [#allocation2]   ;;  %s2953_s18 = sshrl.u32 (!%p201_p1), %s3254_s6, 1 }
  0x4e   : > { %s409_s29 = sshrl.u32 (!%p201_p1), %s407_s0, 4  ;;  %s2956_s7 = sand.u32 (!%p201_p1), 1, %s3254_s6  }
  0x4f   : > { %s2960_s22 = sand.u32 (!%p201_p1), 15, %s407_s0   ;;  %s1803_s23 = sshll.u32 (!%p201_p1), %s409_s29, 7 }
  0x50   : > { %s2963_s24 = scalar_lea.vmem %s2883_s26, %s1803_s23   ;;  %s2966_s25 = scalar_lea.vmem %s2887_s3, %s1803_s23 [#allocation2]  }
  0x51   : > { %s2970_s5 = smul.u32 %s2960_s22, %s3254_s6 }
  0x53   : > { %p1618_p7 = scmp.le.s32.totalorder %s2970_s5, 0 }
  0x54   : > { %s3226_s4 = smov (!%p1618_p7), %s2966_s25  ;;  %s3227_s8 = smov (!%p1618_p7), %s2963_s24 }
  0x55   : > { %1439 = sbr.rel (%p1618_p7) target bundleno = 101 (0x65), region = 303  ;;  %s2979_s12 = smov (!%p1618_p7), 0  }
  0x56   : > { %s2981_s0 = smov (!%p1618_p7), 0   ;;  %s2983_s29 = smov (!%p1618_p7), 0  }
  0x5a LB: >> { %v584_v1 = vld [vmem:[%s2664_s8] sm:$0xff]  ;;  %s586_s23 = sadd.s32 1, %s2668_s12  ;;  %s589_s21 = sadd.s32 1, %s2672_s0  ;;  %s2676_s29 = sphi %s2983_s29, %s577_s29   ;;  %s2672_s0 = sphi %s2981_s0, %s3229_s0   ;;  %s2668_s12 = sphi %s2979_s12, %s3228_s12   ;;  %s2664_s8 = sphi %s3227_s8, %s599_s8   ;;  %s2660_s4 = sphi %s3226_s4, %s600_s4  }
  0x5b   : >> { %585 = vst [vmem:[%s2660_s4] sm:$0xff] %v584_v1  ;;  %p587_p8 = scmp.ge.s32.totalorder %s586_s23, %s2960_s22  ;;  %s577_s29 = sadd.s32 1, %s2676_s29  }
  0x5c   : >> { %p576_p11 = scmp.ge.s32.totalorder %s577_s29, %s2970_s5 }
  0x5d   : >> { %s3264_s23 = smov (%p587_p8, %s586_s23), 0  ;;  %s3266_s21 = smov (!%p587_p8, %s589_s21), %s2672_s0 }
  0x5e   : >> { %p591_p10 = scmp.ge.s32.totalorder %s3266_s21, %s3254_s6  ;;  %s1619_s20 = sshll.u32 %s3264_s23, 3 }
  0x5f   : >> { %s3228_s12 = smov %s3264_s23 }
  0x60   : >> { %s3268_s21 = smov (%p591_p10, %s3266_s21), 0  ;;  %579 = sbr.rel (!%p576_p11) target bundleno = 90 (0x5a), region = 309 }
  0x61   : >> { %s593_s28 = smul.u32 48, %s3268_s21  ;;  %s1620_s10 = sshll.u32 %s3268_s21, 5 }
  0x62   : >> { %s598_s2 = sadd.s32 %s1620_s10, %s1619_s20  ;;  %s3229_s0 = smov %s3268_s21 }
  0x63   : >> { %s595_s14 = sadd.s32 %s1619_s20, %s593_s28  ;;  %s600_s4 = scalar_lea.vmem %s2966_s25, %s598_s2 [#allocation2]  }
  0x64   : >> { %s599_s8 = scalar_lea.vmem %s2963_s24, %s595_s14  }
  0x65 PF: > { %s2774_s27 = smov 1   ;;  %p1623_p12 = scmp.le.s32.totalorder %s2953_s18, 0 }
  0x66   : > { %s601_s10 = sshll.u32 %s2774_s27, %s2891_s19  ;;  %s2678_s14 = smov (!%p1623_p12), %s2950_s16  }
  0x67   : > { %s3006_s2 = sadd.s32 4294967295, %s601_s10  ;;  %1455 = sbr.rel (%p1623_p12) target bundleno = 116 (0x74), region = 314 }
  0x68   : > { %s2682_s28 = smov (!%p1623_p12), %s2947_s15   ;;  %s2686_s20 = smov (!%p1623_p12), 0  }
  0x69   : > { %s2690_s23 = smov (!%p1623_p12), 0  }
  0x6c LB: >> { %v613_v2 = vld [vmem:[%s2684_s28] sm:%s3006_s2]  ;;  %v615_v3 = vld [vmem:[%s2684_s28 + $0x30] sm:%s3006_s2]  ;;  %s617_s19 = sadd.s32 1, %s2688_s20  ;;  %s607_s23 = sadd.s32 1, %s2692_s23   ;;  %s2692_s23 = sphi %s2690_s23, %s607_s23   ;;  %s2688_s20 = sphi %s2686_s20, %s2687_s20   ;;  %s2684_s28 = sphi %s2682_s28, %s622_s28   ;;  %s2680_s14 = sphi %s2678_s14, %s623_s14  }
  0x6d   : >> { %614 = vst [vmem:[%s2680_s14] sm:%s3006_s2] %v613_v2  ;;  %p618_p13 = scmp.ge.s32.totalorder %s617_s19, %s2953_s18  ;;  %p606_p0 = scmp.ge.s32.totalorder %s607_s23, %s2953_s18 }
  0x6e   : >> { %616 = vst [vmem:[%s2680_s14 + $0x20] sm:%s3006_s2] %v615_v3 }
  0x6f   : >> { %s3270_s19 = smov (%p618_p13, %s617_s19), 0  ;;  %609 = sbr.rel (!%p606_p0) target bundleno = 108 (0x6c), region = 320 }
  0x70   : >> { %s620_s27 = smul.u32 96, %s3270_s19  ;;  %s1624_s21 = sshll.u32 %s3270_s19, 6 }
  0x71   : >> { %s623_s14 = scalar_lea.vmem %s2950_s16, %s1624_s21 [#allocation2]   ;;  %s2687_s20 = smov %s3270_s19  }
  0x72   : >> { %s622_s28 = scalar_lea.vmem %s2947_s15, %s620_s27  }
  0x74 PF: > { %s3230_s22 = smul.u32 96, %s2953_s18  ;;  %s3231_s25 = sshll.u32 %s2953_s18, 6 }
  0x75   : > { %s630_s5 = scalar_lea.vmem %s2950_s16, %s3231_s25 [#allocation2]   ;;  %p1628_p1 = scmp.le.s32.totalorder %s2956_s7, 0 }
  0x76   : > { %s628_s24 = scalar_lea.vmem %s2947_s15, %s3230_s22   ;;  %s2694_s4 = smov (!%p1628_p1), %s630_s5  }
  0x77   : > { %1469 = sbr.rel (%p1628_p1) target bundleno = 132 (0x84), region = 325  ;;  %s2698_s8 = smov (!%p1628_p1), %s628_s24  }
  0x78   : > { %s2702_s12 = smov (!%p1628_p1), 0   ;;  %s2706_s0 = smov (!%p1628_p1), 0  }
  0x7c LB: >> { %v640_v4 = vld [vmem:[%s2700_s8] sm:%s3006_s2]  ;;  %s642_s15 = sadd.s32 1, %s2704_s12  ;;  %s634_s0 = sadd.s32 1, %s2708_s0   ;;  %s2708_s0 = sphi %s2706_s0, %s634_s0   ;;  %s2704_s12 = sphi %s2702_s12, %s2703_s12   ;;  %s2700_s8 = sphi %s2698_s8, %s647_s8   ;;  %s2696_s4 = sphi %s2694_s4, %s648_s4  }
  0x7d   : >> { %641 = vst [vmem:[%s2696_s4] sm:%s3006_s2] %v640_v4  ;;  %p643_p2 = scmp.ge.s32.totalorder %s642_s15, %s2956_s7  ;;  %p633_p3 = scmp.ge.s32.totalorder %s634_s0, %s2956_s7 }
  0x7f   : >> { %s3272_s15 = smov (%p643_p2, %s642_s15), 0  ;;  %636 = sbr.rel (!%p633_p3) target bundleno = 124 (0x7c), region = 331 }
  0x80   : >> { %s645_s16 = smul.u32 48, %s3272_s15  ;;  %s1629_s18 = sshll.u32 %s3272_s15, 5 }
  0x81   : >> { %s648_s4 = scalar_lea.vmem %s630_s5, %s1629_s18 [#allocation2]   ;;  %s2703_s12 = smov %s3272_s15  }
  0x82   : >> { %s647_s8 = scalar_lea.vmem %s628_s24, %s645_s16  }
  0x84 PF: > { %p1630_p4 = scmp.ge.u32.totalorder %s2885_s30, 8 }
  0x85   : > { %s3032_s29 = sshrl.u32 (!%p1630_p4), %s3254_s6, 1  ;;  %s2775_s10 = smov (!%p1630_p4), 1  }
  0x86   : > { %151 = sbr.rel (%p1630_p4) target bundleno = 168 (0xa8), region = 32  ;;  %s152_s14 = sshll.u32 (!%p1630_p4), %s2775_s10, %s2885_s30 }
  0x87   : > { %s3035_s28 = sadd.s32 (!%p1630_p4), 4294967295, %s152_s14  ;;  %p1632_p5 = scmp.le.s32.totalorder (!%p1630_p4), %s3032_s29, 0 }
  0x8b   : > { %1483 = sbr.rel (%p1632_p5) target bundleno = 152 (0x98), region = 336  ;;  %s2710_s20 = smov (!%p1632_p5), %s2887_s3  }
  0x8c   : > { %s2714_s7 = smov (!%p1632_p5), %s2883_s26   ;;  %s2718_s2 = smov (!%p1632_p5), 0  }
  0x8d   : > { %s2722_s23 = smov (!%p1632_p5), 0  }
  0x90 LB: >> { %v164_v5 = vld [vmem:[%s2716_s7] sm:%s3035_s28]  ;;  %v166_v6 = vld [vmem:[%s2716_s7 + $0x30] sm:%s3035_s28]  ;;  %s168_s30 = sadd.s32 1, %s2720_s2  ;;  %s158_s23 = sadd.s32 1, %s2724_s23   ;;  %s2724_s23 = sphi %s2722_s23, %s158_s23   ;;  %s2720_s2 = sphi %s2718_s2, %s2719_s2   ;;  %s2716_s7 = sphi %s2714_s7, %s173_s7   ;;  %s2712_s20 = sphi %s2710_s20, %s174_s20  }
  0x91   : >> { %165 = vst [vmem:[%s2712_s20] sm:%s3035_s28] %v164_v5  ;;  %p169_p6 = scmp.ge.s32.totalorder %s168_s30, %s3032_s29  ;;  %p157_p7 = scmp.ge.s32.totalorder %s158_s23, %s3032_s29 }
  0x92   : >> { %167 = vst [vmem:[%s2712_s20 + $0x20] sm:%s3035_s28] %v166_v6 }
  0x93   : >> { %s3274_s30 = smov (%p169_p6, %s168_s30), 0  ;;  %160 = sbr.rel (!%p157_p7) target bundleno = 144 (0x90), region = 342 }
  0x94   : >> { %s171_s19 = smul.u32 96, %s3274_s30  ;;  %s1633_s27 = sshll.u32 %s3274_s30, 6 }
  0x95   : >> { %s174_s20 = scalar_lea.vmem %s2887_s3, %s1633_s27 [#allocation2]   ;;  %s2719_s2 = smov %s3274_s30  }
  0x96   : >> { %s173_s7 = scalar_lea.vmem %s2883_s26, %s171_s19  }
  0x98 PF: > { %s3049_s21 = sand.u32 1, %s3254_s6   ;;  %s1635_s22 = smul.u32 96, %s3032_s29 }
  0x99   : > { %s1806_s24 = sshll.u32 %s3032_s29, 6  ;;  %p1637_p8 = scmp.le.s32.totalorder %s3049_s21, 0 }
  0x9a   : > { %s179_s25 = scalar_lea.vmem %s2883_s26, %s1635_s22   ;;  %s181_s5 = scalar_lea.vmem %s2887_s3, %s1806_s24 [#allocation2]  }
  0x9b   : > { %1497 = sbr.rel (%p1637_p8) target bundleno = 168 (0xa8), region = 347  ;;  %s2726_s4 = smov (!%p1637_p8), %s181_s5  }
  0x9c   : > { %s2730_s8 = smov (!%p1637_p8), %s179_s25   ;;  %s2734_s12 = smov (!%p1637_p8), 0  }
  0x9d   : > { %s2738_s0 = smov (!%p1637_p8), 0  }
  0xa0 LB: >> { %v191_v7 = vld [vmem:[%s2732_s8] sm:%s3035_s28]  ;;  %s193_s6 = sadd.s32 1, %s2736_s12  ;;  %s185_s0 = sadd.s32 1, %s2740_s0   ;;  %s2740_s0 = sphi %s2738_s0, %s185_s0   ;;  %s2736_s12 = sphi %s2734_s12, %s2735_s12   ;;  %s2732_s8 = sphi %s2730_s8, %s198_s8   ;;  %s2728_s4 = sphi %s2726_s4, %s199_s4  }
  0xa1   : >> { %192 = vst [vmem:[%s2728_s4] sm:%s3035_s28] %v191_v7  ;;  %p194_p10 = scmp.ge.s32.totalorder %s193_s6, %s3049_s21  ;;  %p184_p11 = scmp.ge.s32.totalorder %s185_s0, %s3049_s21 }
  0xa3   : >> { %s3276_s6 = smov (%p194_p10, %s193_s6), 0  ;;  %187 = sbr.rel (!%p184_p11) target bundleno = 160 (0xa0), region = 353 }
  0xa4   : >> { %s196_s26 = smul.u32 48, %s3276_s6  ;;  %s1638_s3 = sshll.u32 %s3276_s6, 5 }
  0xa5   : >> { %s199_s4 = scalar_lea.vmem %s181_s5, %s1638_s3 [#allocation2]   ;;  %s2735_s12 = smov %s3276_s6  }
  0xa6   : >> { %s198_s8 = scalar_lea.vmem %s179_s25, %s196_s26  }
  0xa8 PF: > { %p1639_p12 = scmp.ge.s32.totalorder %s2636_s17, 1  ;;  %p660_p13 = scmp.lt.s32.totalorder %s2636_s17, 5 }
  0xaa   : > { %p661_p0 = pnand %p1639_p12, %p660_p13 }
  0xab   : > { %s667_s15 = sand.u32 (!%p661_p0), 1, %s2612_s11   ;;  %s689_s16 = sand.u32 (!%p661_p0), 1, %s2604_s9  }
  0xac   : > { %664 = sbr.rel (%p661_p0) target bundleno = 405 (0x195), region = 118  ;;  %s1640_s18 = sshll.u32 (!%p661_p0), %s667_s15, 6 }
  0xad   : > { %s1641_s29 = sshll.u32 (!%p661_p0), %s689_s16, 4  ;;  %s1642_s10 = sshll.u32 (!%p661_p0), %s2620_s13, 6 }
  0xae   : > { %p703_p1 = scmp.lt.s32.totalorder (!%p661_p0), %s1642_s10, 127  ;;  %s3070_s2 = scalar_lea.vmem (!%p661_p0), [#allocation2], %s1640_s18 }
  0xaf   : > { %s3072_s23 = scalar_lea.vmem (!%p661_p0), [#allocation3], %s1641_s29   ;;  %p1644_p2 = scmp.ne.s32.totalorder (!%p661_p0), %s2620_s13, 0 }
  0xb1   : > { %s3278_s10 = smov (!%p703_p1, %s1642_s10), 127  ;;  %716 = sbr.rel (%p1644_p2) target bundleno = 185 (0xb9), region = 126 }
  0xb2   : > { %s1643_s14 = sshll.u32 %s3278_s10, 2 }
  0xb3   : > { %s3068_s7 = scalar_lea.vmem %s3197_s1, %s1643_s14 }
  0xb6   : > { %vm717_vm0 = vcmask 130048   ;;  %v2776_v8 = vmov 0.0  }
  0xb7   : > { %718 = vst.msk [vmem:[%s3072_s23] sm:$0xff] %vm717_vm0, %v2776_v8 }
  0xb8   : > { %719 = vst.msk [vmem:[%s3072_s23 + $0x8] sm:$0xff] %vm717_vm0, %v2776_v8 }
  0xb9 PF: > { %v1814_v9 = vld [vmem:[%s3068_s7 + $0x38] sm:$0xff]  ;;  %v1813_v13 = vld [vmem:[%s3068_s7 + $0x30] sm:$0xff]  ;;  %v1812_v17 = vld [vmem:[%s3068_s7 + $0x28] sm:$0xff]  ;;  %v728_v25 = vlaneseq  ;;  %p733_p3 = scmp.lt.s32.totalorder %s2620_s13, 1  ;;  %vm1073_vm6 = vcmask 130048   ;;  %s3237_s13 = sld [smem:[#allocation6_spill]] (%p2860_p9) }
  0xba   : > { %v1822_v10 = vld [vmem:[%s3068_s7 + $0x78] sm:$0xff]  ;;  %1015 = vmatpush.bf16.msra.mxu0 %v1814_v9  ;;  %v1821_v14 = vld [vmem:[%s3068_s7 + $0x70] sm:$0xff]  ;;  %v1820_v18 = vld [vmem:[%s3068_s7 + $0x68] sm:$0xff]  ;;  %s3238_s24 = sld [smem:[#allocation15_spill]] (%p2860_p9) }
  0xbb   : > { %v1830_v11 = vld [vmem:[%s3068_s7 + $0xb8] sm:$0xff]  ;;  %1029 = vmatpush.bf16.msra.mxu1 %v1822_v10  ;;  %v1829_v15 = vld [vmem:[%s3068_s7 + $0xb0] sm:$0xff]  ;;  %v1828_v19 = vld [vmem:[%s3068_s7 + $0xa8] sm:$0xff]  ;;  %v729_v30 = vand.u32 127, %v728_v25  ;;  %s738_s9 = scalar_select %p733_p3, 1, 0 }
  0xbc   : > { %v1838_v12 = vld [vmem:[%s3068_s7 + $0xf8] sm:$0xff]  ;;  %1043 = vmatpush.bf16.msra.mxu2 %v1830_v11  ;;  %v1837_v16 = vld [vmem:[%s3068_s7 + $0xf0] sm:$0xff]  ;;  %v1836_v20 = vld [vmem:[%s3068_s7 + $0xe8] sm:$0xff] }
  0xbd   : > { %1057 = vmatpush.bf16.msra.mxu3 %v1838_v12  ;;  %v1811_v21 = vld [vmem:[%s3068_s7 + $0x20] sm:$0xff]  ;;  %v1810_v26 = vld [vmem:[%s3068_s7 + $0x18] sm:$0xff]  ;;  %v1809_v31 = vld [vmem:[%s3068_s7 + $0x10] sm:$0xff]  ;;  %v730_v35 = vadd.s32 128, %v729_v30  ;;  %v739_v36 = vstv %s738_s9 }
  0xbe   : > { %1016 = vmatpush.bf16.msra.mxu0 %v1813_v13  ;;  %v1819_v22 = vld [vmem:[%s3068_s7 + $0x60] sm:$0xff]  ;;  %v1818_v27 = vld [vmem:[%s3068_s7 + $0x58] sm:$0xff]  ;;  %v1817_v32 = vld [vmem:[%s3068_s7 + $0x50] sm:$0xff]  ;;  %vm3106_vm2 = vcmp.eq.s32.totalorder %v739_v36, 1 }
  0xbf   : > { %1030 = vmatpush.bf16.msra.mxu1 %v1821_v14  ;;  %v1827_v23 = vld [vmem:[%s3068_s7 + $0xa0] sm:$0xff]  ;;  %v1826_v28 = vld [vmem:[%s3068_s7 + $0x98] sm:$0xff]  ;;  %v1825_v33 = vld [vmem:[%s3068_s7 + $0x90] sm:$0xff]  ;;  %vm735_vm1 = vcmp.lt.s32.totalorder %v730_v35, 188  ;;  %s1783_s30 = sshll.u32 (%p2860_p9), %s3237_s13, 1  ;;  %s1839_s19 = sshll.u32 (%p2860_p9), %s3237_s13, 4 }
  0xc0   : > { %1044 = vmatpush.bf16.msra.mxu2 %v1829_v15  ;;  %v1835_v24 = vld [vmem:[%s3068_s7 + $0xe0] sm:$0xff]  ;;  %v1834_v29 = vld [vmem:[%s3068_s7 + $0xd8] sm:$0xff]  ;;  %v1833_v34 = vld [vmem:[%s3068_s7 + $0xd0] sm:$0xff]  ;;  %s1084_s27 = ssub.s32 (%p2860_p9), 3, %s1783_s30  ;;  %s3145_s25 = scalar_lea.vmem (%p2860_p9), %s3238_s24, %s1839_s19  }
  0xc1   : > { %1058 = vmatpush.bf16.msra.mxu3 %v1837_v16  ;;  %v1808_v37 = vld [vmem:[%s3068_s7 + $0x8] sm:$0xff]  ;;  %v1807_v42 = vld [vmem:[%s3068_s7] sm:$0xff]  ;;  %vm3120_vm3 = vmor %vm3106_vm2, %vm735_vm1  ;;  %p1085_p4 = scmp.lt.s32.totalorder (%p2860_p9), %s1084_s27, 2 }
  0xc2   : > { %1017 = vmatpush.bf16.msra.mxu0 %v1812_v17  ;;  %v1816_v38 = vld [vmem:[%s3068_s7 + $0x48] sm:$0xff]  ;;  %v1815_v43 = vld [vmem:[%s3068_s7 + $0x40] sm:$0xff]  ;;  %v722_v51 = vld [vmem:[%s3070_s2 + $0x10] sm:$0xff] }
  0xc3   : > { %1031 = vmatpush.bf16.msra.mxu1 %v1820_v18  ;;  %v1824_v39 = vld [vmem:[%s3068_s7 + $0x88] sm:$0xff]  ;;  %v1823_v44 = vld [vmem:[%s3068_s7 + $0x80] sm:$0xff]  ;;  %v726_v52 = vld [vmem:[%s3070_s2 + $0x30] sm:$0xff] }
  0xc4   : > { %1045 = vmatpush.bf16.msra.mxu2 %v1828_v19  ;;  %v1832_v40 = vld [vmem:[%s3068_s7 + $0xc8] sm:$0xff]  ;;  %v1831_v45 = vld [vmem:[%s3068_s7 + $0xc0] sm:$0xff]  ;;  %v723_v53 = vld [vmem:[%s3070_s2 + $0x18] sm:$0xff]  ;;  %v1777_v57 = vpack.c.bf16 %v726_v52, %v722_v51 }
  0xc5   : > { %1059 = vmatpush.bf16.msra.mxu3 %v1836_v20  ;;  %v720_v46 = vld [vmem:[%s3070_s2] sm:$0xff]  ;;  %v721_v48 = vld [vmem:[%s3070_s2 + $0x8] sm:$0xff]  ;;  %v727_v54 = vld [vmem:[%s3070_s2 + $0x38] sm:$0xff] }
  0xc6   : > { %1018 = vmatpush.bf16.msra.mxu0 %v1811_v21  ;;  %v724_v47 = vld [vmem:[%s3070_s2 + $0x20] sm:$0xff]  ;;  %v725_v49 = vld [vmem:[%s3070_s2 + $0x28] sm:$0xff]  ;;  %vm1773_vm4 = vmpackc.low %vm3120_vm3, %vm3120_vm3  ;;  %v1780_v58 = vpack.c.bf16 %v727_v54, %v723_v53 }
  0xc7   : > { %1032 = vmatpush.bf16.msra.mxu1 %v1819_v22  ;;  %v755_v55 = vpack.c.bf16 %v724_v47, %v720_v46  ;;  %v1774_v56 = vpack.c.bf16 %v725_v49, %v721_v48  ;;  %vm1776_vm5 = vmpackc.low %vm3106_vm2, %vm3106_vm2  ;;  %v753_v1 = vld [vmem:[%s3072_s23] sm:$0xff]  ;;  %v754_v9 = vld [vmem:[%s3072_s23 + $0x8] sm:$0xff] }
  0xc8   : > { %1046 = vmatpush.bf16.msra.mxu2 %v1827_v23 }
  0xc9   : > { %1060 = vmatpush.bf16.msra.mxu3 %v1835_v24 }
  0xca   : > { %1019 = vmatpush.bf16.msra.mxu0 %v1810_v26 }
  0xcb   : > { %1033 = vmatpush.bf16.msra.mxu1 %v1818_v27 }
  0xcc   : > { %1047 = vmatpush.bf16.msra.mxu2 %v1826_v28 }
  0xcd   : > { %1061 = vmatpush.bf16.msra.mxu3 %v1834_v29 }
  0xce   : > { %1020 = vmatpush.bf16.msra.mxu0 %v1809_v31 }
  0xcf   : > { %1034 = vmatpush.bf16.msra.mxu1 %v1817_v32 }
  0xd0   : > { %1048 = vmatpush.bf16.msra.mxu2 %v1825_v33 }
  0xd1   : > { %1062 = vmatpush.bf16.msra.mxu3 %v1833_v34 }
  0xd2   : > { %1021 = vmatpush.bf16.msra.mxu0 %v1808_v37 }
  0xd3   : > { %1035 = vmatpush.bf16.msra.mxu1 %v1816_v38 }
  0xd4   : > { %1049 = vmatpush.bf16.msra.mxu2 %v1824_v39 }
  0xd5   : > { %1063 = vmatpush.bf16.msra.mxu3 %v1832_v40 }
  0xd6   : > { %1022 = vmatpush.bf16.msra.mxu0 %v1807_v42 }
  0xd7   : > { %1036 = vmatpush.bf16.msra.mxu1 %v1815_v43 }
  0xd8   : > { %1050 = vmatpush.bf16.msra.mxu2 %v1823_v44 }
  0xd9   : > { %1064 = vmatpush.bf16.msra.mxu3 %v1831_v45  ;;  %1023 = vmatmul.bf16.vlgmr.msra.gmra.mxu0 %v755_v55 }
  0xda   : > { %1775 = vmatmul.msk.bf16.vlgmr.msra.gmra.mxu1 %vm1773_vm4, %v1774_v56 }
  0xdb   : > { %1778 = vmatmul.msk.bf16.vlgmr.msra.gmra.mxu2 %vm1776_vm5, %v1777_v57 }
  0xdc   : > { %1781 = vmatmul.msk.bf16.vlgmr.msra.gmra.mxu3 %vm1776_vm5, %v1780_v58 }
 0x156   : > { %v1024_v59 = vpop.f32.mrf.mxu0 }
 0x157   : > { %v1038_v60 = vpop.f32.mrf.mxu1 }
 0x158   : > { %v1039_v61 = vadd.f32 %v1038_v60, %v1024_v59 }
 0x15e   : > { %v1052_v62 = vpop.f32.mrf.mxu2  ;;  %v1026_v3 = vpop.f32.mrf.mxu0 }
 0x15f   : > { %v1066_v63 = vpop.f32.mrf.mxu3  ;;  %v1053_v0 = vadd.f32 %v1052_v62, %v1039_v61  ;;  %v1040_v4 = vpop.f32.mrf.mxu1 }
 0x160   : > { %v1041_v6 = vadd.f32 %v1040_v4, %v1026_v3 }
 0x161   : > { %v1067_v2 = vadd.f32 %v1066_v63, %v1053_v0 }
 0x163   : > { %v1071_v5 = vadd.f32 %v1067_v2, %v753_v1 }
 0x165   : > { %1074 = vst.msk [vmem:[%s3072_s23] sm:$0xff] %vm1073_vm6, %v1071_v5 }
 0x166   : > { %v1054_v7 = vpop.f32.mrf.mxu2 }
 0x167   : > { %v1055_v8 = vadd.f32 %v1054_v7, %v1041_v6  ;;  %v1068_v10 = vpop.f32.mrf.mxu3 }
 0x169   : > { %v1069_v11 = vadd.f32 %v1068_v10, %v1055_v8  ;;  %1082 = sbr.rel (!%p2860_p9) target bundleno = 405 (0x195), region = 130 }
 0x16b   : > { %v1072_v12 = vadd.f32 %v1069_v11, %v754_v9 }
 0x16d   : > { %1075 = vst.msk [vmem:[%s3072_s23 + $0x8] sm:$0xff] %vm1073_vm6, %v1072_v12 }
 0x16e   : > { %s3280_s27 = smov (!%p1085_p4, %s1084_s27), 2 }
 0x16f   : > { %s1784_s5 = sshll.u32 %s3280_s27, 3 }
 0x170   : > { %p1787_p5 = scmp.eq.s32.totalorder %s1784_s5, 0 }
 0x171   : > { %s3151_s4 = sshrl.u32 (!%p1787_p5), %s3280_s27, 1 }
 0x172   : > { %1093 = sbr.rel (%p1787_p5) target bundleno = 405 (0x195), region = 134  ;;  %p1788_p9 = scmp.le.s32.totalorder (!%p1787_p5), %s3151_s4, 0 }
 0x177   : > { %1511 = sbr.rel (%p1788_p9) target bundleno = 388 (0x184), region = 358  ;;  %s2742_s8 = smov (!%p1788_p9), %s3145_s25  }
 0x178   : > { %s2746_s12 = smov (!%p1788_p9), %s3072_s23   ;;  %s2750_s0 = smov (!%p1788_p9), 0  }
 0x179   : > { %s2754_s6 = smov (!%p1788_p9), 0  }
 0x17c LB: >> { %v1158_v13 = vld [vmem:[%s2748_s12] sm:$0xff]  ;;  %v1160_v14 = vld [vmem:[%s2748_s12 + $0x8] sm:$0xff]  ;;  %s1162_s26 = sadd.s32 1, %s2752_s0  ;;  %s1152_s6 = sadd.s32 1, %s2756_s6   ;;  %s2756_s6 = sphi %s2754_s6, %s1152_s6   ;;  %s2752_s0 = sphi %s2750_s0, %s2751_s0   ;;  %s2748_s12 = sphi %s2746_s12, %s1167_s12   ;;  %s2744_s8 = sphi %s2742_s8, %s1168_s8  }
 0x17d   : >> { %1159 = vst [vmem:[%s2744_s8] sm:$0xff] %v1158_v13  ;;  %p1163_p6 = scmp.ge.s32.totalorder %s1162_s26, %s3151_s4  ;;  %p1151_p7 = scmp.ge.s32.totalorder %s1152_s6, %s3151_s4 }
 0x17e   : >> { %1161 = vst [vmem:[%s2744_s8 + $0x8] sm:$0xff] %v1160_v14 }
 0x17f   : >> { %s3282_s26 = smov (%p1163_p6, %s1162_s26), 0  ;;  %1154 = sbr.rel (!%p1151_p7) target bundleno = 380 (0x17c), region = 364 }
 0x180   : >> { %s1789_s3 = sshll.u32 %s3282_s26, 4  ;;  %s2751_s0 = smov %s3282_s26  }
 0x181   : >> { %s1167_s12 = scalar_lea.vmem %s3072_s23, %s1789_s3 [#allocation3]   ;;  %s1168_s8 = scalar_lea.vmem %s3145_s25, %s1789_s3  }
 0x184 PF: > { %s3161_s15 = sand.u32 1, %s3280_s27   ;;  %s1840_s16 = sshll.u32 %s3151_s4, 4 }
 0x185   : > { %s1173_s18 = scalar_lea.vmem %s3072_s23, %s1840_s16 [#allocation3]   ;;  %s1175_s29 = scalar_lea.vmem %s3145_s25, %s1840_s16  }
 0x186   : > { %p1794_p8 = scmp.le.s32.totalorder %s3161_s15, 0 }
 0x187   : > { %s2758_s10 = smov (!%p1794_p8), %s1175_s29   ;;  %s2762_s14 = smov (!%p1794_p8), %s1173_s18  }
 0x188   : > { %1525 = sbr.rel (%p1794_p8) target bundleno = 405 (0x195), region = 369  ;;  %s2766_s28 = smov (!%p1794_p8), 0  }
 0x189   : > { %s2770_s20 = smov (!%p1794_p8), 0  }
 0x18d LB: >> { %v1185_v15 = vld [vmem:[%s2764_s14] sm:$0xff]  ;;  %s1187_s7 = sadd.s32 1, %s2768_s28  ;;  %s1179_s20 = sadd.s32 1, %s2772_s20   ;;  %s2772_s20 = sphi %s2770_s20, %s1179_s20   ;;  %s2768_s28 = sphi %s2766_s28, %s2767_s28   ;;  %s2764_s14 = sphi %s2762_s14, %s1192_s14   ;;  %s2760_s10 = sphi %s2758_s10, %s1193_s10  }
 0x18e   : >> { %1186 = vst [vmem:[%s2760_s10] sm:$0xff] %v1185_v15  ;;  %p1188_p10 = scmp.ge.s32.totalorder %s1187_s7, %s3161_s15  ;;  %p1178_p11 = scmp.ge.s32.totalorder %s1179_s20, %s3161_s15 }
 0x190   : >> { %s3284_s7 = smov (%p1188_p10, %s1187_s7), 0  ;;  %1181 = sbr.rel (!%p1178_p11) target bundleno = 397 (0x18d), region = 375 }
 0x191   : >> { %s1795_s2 = sshll.u32 %s3284_s7, 3  ;;  %s2767_s28 = smov %s3284_s7  }
 0x192   : >> { %s1192_s14 = scalar_lea.vmem %s1173_s18, %s1795_s2 [#allocation3]   ;;  %s1193_s10 = scalar_lea.vmem %s1175_s29, %s1795_s2  }
 0x195 PF: > { %s12_s17 = sadd.s32 1, %s2636_s17   ;;  %s3239_s9 = sld [smem:[#allocation4_spill]] }
 0x196   : > { %p9_p12 = scmp.ge.s32.totalorder %s12_s17, 6   ;;  %s3240_s10 = sld [smem:[#allocation12_spill]] }
 0x197   : > { %s3241_s11 = sld [smem:[#allocation5_spill]] }
 0x198   : > { %s3242_s12 = sld [smem:[#allocation13_spill]]  ;;  %11 = sbr.rel (!%p9_p12) target bundleno = 8 (0x8), region = 386 }
 0x199   : > { %s3243_s13 = sld [smem:[#allocation7_spill]] }
 0x19a   : > { %s3244_s14 = sld [smem:[#allocation8_spill]] }
 0x19b   : > { %s3245_s15 = sld [smem:[#allocation9_spill]] }
 0x19c   : > { %s3246_s16 = sld [smem:[#allocation10_spill]] }

</bundles_post_ra>
